<compile_context>
chip_gen: v5e
topology: v5e:2x2
jax: 0.10.0
libtpu: 0.0.40
codegen_flags: <defaults>
</compile_context>

<pallas_src>
import jax
import jax.numpy as jnp
from jax.experimental import pallas as pl
from jax.experimental.pallas import tpu as pltpu


# ---------------------------------------------------------------------------
# Parameter preparation (run once, outside the per-call path).
# ---------------------------------------------------------------------------
def prepare_final_layer_params(w_ada, b_ada, w_lin, b_lin, *,
                               matmul_dtype=jnp.bfloat16,
                               pad_out_lanes=False):
    """Split/cast/pad the FinalLayer weights once.

    w_ada : (D, 2H), b_ada : (2H,), w_lin : (H, out_dim), b_lin : (out_dim,)
    """
    H, out_dim = w_lin.shape
    assert w_ada.shape[-1] == 2 * H, "w_ada must be (time_emb_dim, 2*hidden)"
    b_lin2 = b_lin.reshape(1, out_dim)
    w_lin2 = w_lin
    if pad_out_lanes and out_dim % 128 != 0:
        out_pad = ((out_dim + 127) // 128) * 128
        w_lin2 = jnp.zeros((H, out_pad), w_lin.dtype).at[:, :out_dim].set(w_lin)
        b_lin2 = jnp.zeros((1, out_pad), b_lin.dtype).at[:, :out_dim].set(b_lin2)
    return dict(
        w_shift=w_ada[:, :H].astype(jnp.float32),
        w_scale=w_ada[:, H:].astype(jnp.float32),
        b_shift=b_ada[:H].reshape(1, H).astype(jnp.float32),
        b_scale=b_ada[H:].reshape(1, H).astype(jnp.float32),
        w_lin=w_lin2.astype(matmul_dtype),
        b_lin=b_lin2.astype(jnp.float32),
        logical_out_dim=int(out_dim),
    )


# ---------------------------------------------------------------------------
# Kernel 1: adaLN branch (tiny, whole batch, single block, runs once).
#   scale1  = 1 + SiLU(c) @ W_scale + b_scale                 (B, H)
#   bias_eff = (SiLU(c) @ W_shift + b_shift) @ W_lin + b_lin  (B, out_dim)
# ---------------------------------------------------------------------------
def _adaln_kernel(c_ref, ws_ref, wsc_ref, bs_ref, bsc_ref, wlin_ref, blin_ref,
                  scale1_ref, bias_ref):
    c = c_ref[...].astype(jnp.float32)
    s = c * jax.nn.sigmoid(c)                                  # SiLU (EUP)
    shift = jnp.dot(s, ws_ref[...], preferred_element_type=jnp.float32)
    shift = shift + bs_ref[...]
    scale = jnp.dot(s, wsc_ref[...], preferred_element_type=jnp.float32)
    scale1_ref[...] = 1.0 + scale + bsc_ref[...]
    # Fold shift into the final-linear bias: (x_mod + shift) @ W = x_mod@W + shift@W.
    bias = jnp.dot(shift.astype(wlin_ref.dtype), wlin_ref[...],
                   preferred_element_type=jnp.float32)
    bias_ref[...] = bias + blin_ref[...]


def _adaln(c, params, vmem_limit):
    B = c.shape[0]
    H = params["w_shift"].shape[-1]
    out_w = params["w_lin"].shape[-1]
    scale1, bias_eff = pl.pallas_call(
        _adaln_kernel,
        out_shape=(jax.ShapeDtypeStruct((B, H), jnp.float32),
                   jax.ShapeDtypeStruct((B, out_w), jnp.float32)),
        compiler_params=pltpu.CompilerParams(vmem_limit_bytes=int(vmem_limit)),
    )(c, params["w_shift"], params["w_scale"], params["b_shift"],
      params["b_scale"], params["w_lin"], params["b_lin"])
    # Reshape to (B, 1, ·) so the main kernel can index the leading axis.
    return scale1.reshape(B, 1, H), bias_eff.reshape(B, 1, out_w)


# ---------------------------------------------------------------------------
# Kernel 2: streaming LayerNorm -> scale -> final linear, tiled over tokens.
#   x_ref      : (tile_t, H)        token tile (batch dim squeezed)
#   scale1_ref : (B, 1, H)          resident, indexed by pl.program_id(0)
#   bias_ref   : (B, 1, out_w)      resident (shift already folded in)
#   w_ref      : (H, out_w)         final-linear weight (bf16 by default)
#   o_ref      : (tile_t, out_w)
# ---------------------------------------------------------------------------
def _final_layer_kernel(x_ref, scale1_ref, bias_ref, w_ref, o_ref):
    b = pl.program_id(0)
    x = x_ref[...].astype(jnp.float32)                         # (tile_t, H)
    inv_h = 1.0 / x.shape[-1]

    # Two-pass LayerNorm (matches nn.LayerNorm: biased var, eps=1e-6, no affine).
    mean = jnp.sum(x, axis=-1, keepdims=True) * inv_h
    xc = x - mean
    var = jnp.sum(xc * xc, axis=-1, keepdims=True) * inv_h
    x_norm = xc * jax.lax.rsqrt(var + 1e-6)

    # modulate (shift is folded into bias): x_norm * (1 + scale)
    x_mod = x_norm * scale1_ref[b]                             # (1, H) broadcast

    # Final linear on the MXU (bf16 operands by default, f32 accumulation).
    out = jnp.dot(x_mod.astype(w_ref.dtype), w_ref[...],
                  preferred_element_type=jnp.float32)
    out = out + bias_ref[b]                                    # (1, out_w) broadcast
    o_ref[...] = out.astype(o_ref.dtype)


# ---------------------------------------------------------------------------
# Generation-aware sizing helpers.
# ---------------------------------------------------------------------------
def _vmem_budget_bytes():
    cap = 64 << 20
    try:
        info = pltpu.get_tpu_info()
        cap = int(getattr(info, "vmem_capacity_bytes", cap))
    except Exception:
        pass
    # Leave headroom for Mosaic internal scratch / pipeliner metadata:
    #   v7x  (64 MiB)  -> ~48 MiB budget
    #   v5e/v6e (128 MiB) -> ~96 MiB budget (capped at 100 MiB)
    budget = cap - max(cap // 4, 8 << 20)
    return max(min(budget, 100 << 20), 4 << 20)


def _choose_tile_t(T, H, out_w, x_item, out_item, w_item, budget, batch,
                   max_tile=2048):
    """Largest token tile that fits the VMEM budget (multiple of 8)."""
    if T <= 8:
        return T
    per_tok = (2 * H * x_item            # double-buffered x block
               + 5 * H * 4 + 2 * H       # f32 LN temporaries + bf16 x_mod
               + 2 * out_w * out_item    # double-buffered out block
               + 4 * out_w)              # f32 matmul result
    fixed = 2 * H * out_w * w_item + 4 * batch * (H + out_w) + (2 << 20)
    avail = max(budget - fixed, 8 * per_tok)
    tile = min(int(avail // per_tok), max_tile, T)
    if tile >= T:
        return T                         # full-extent block is always legal
    if batch == 1:
        # Keep >= ~4 token steps so both v7x TensorCores get work.
        per_core = -(-T // 4)
        per_core = ((per_core + 7) // 8) * 8
        tile = min(tile, max(8, per_core))
    return max(8, (tile // 8) * 8)


# ---------------------------------------------------------------------------
# Public wrapper.
# ---------------------------------------------------------------------------
def final_layer(x, c, w_ada=None, b_ada=None, w_lin=None, b_lin=None, *,
                params=None, matmul_dtype=jnp.bfloat16, tile_t=None):
    """FinalLayer forward.  x: (B, T, H), c: (B, D) -> (B, T, out_dim).

    Pass `params=prepare_final_layer_params(...)` to amortize weight prep
    across calls (recommended).  With pad_out_lanes=True in the prep, the
    returned array is lane-padded (B, T, out_pad) for downstream consumers.
    """
    if params is None:
        # Convenience path: prep per call.  Prefer preparing once outside.
        params = prepare_final_layer_params(w_ada, b_ada, w_lin, b_lin,
                                            matmul_dtype=matmul_dtype)
    B, T, H = x.shape
    assert params["w_shift"].shape[-1] == H
    out_w = params["w_lin"].shape[-1]        # materialized width (maybe padded)

    budget = _vmem_budget_bytes()

    # adaLN branch: once per call, not per token tile.
    scale1, bias_eff = _adaln(c, params, budget)

    x_item = jnp.dtype(x.dtype).itemsize
    w_item = jnp.dtype(params["w_lin"].dtype).itemsize
    if tile_t is None:
        tile_t = _choose_tile_t(T, H, out_w, x_item, x_item, w_item, budget, B)
    else:
        tile_t = max(1, min(int(tile_t), T))
        if tile_t != T and tile_t % 8 != 0:
            tile_t = max(8, (tile_t // 8) * 8)
            tile_t = min(tile_t, T)

    grid = (B, pl.cdiv(T, tile_t))

    grid_spec = pltpu.PrefetchScalarGridSpec(
        num_scalar_prefetch=0,
        grid=grid,
        in_specs=[
            # x token tile (batch dim squeezed out of the kernel view).
            pl.BlockSpec((pl.Squeezed(), tile_t, H), lambda b, t: (b, t, 0)),
            # Per-batch (1 + scale): whole array resident in VMEM.
            pl.BlockSpec((B, 1, H), lambda b, t: (0, 0, 0)),
            # Per-batch effective bias: whole array resident in VMEM.
            pl.BlockSpec((B, 1, out_w), lambda b, t: (0, 0, 0)),
            # Final-linear weight (constant block).
            pl.BlockSpec((H, out_w), lambda b, t: (0, 0)),
        ],
        out_specs=pl.BlockSpec((pl.Squeezed(), tile_t, out_w),
                               lambda b, t: (b, t, 0)),
    )

    return pl.pallas_call(
        _final_layer_kernel,
        out_shape=jax.ShapeDtypeStruct((B, T, out_w), x.dtype),
        grid_spec=grid_spec,
        compiler_params=pltpu.CompilerParams(
            dimension_semantics=("parallel", "parallel"),
            vmem_limit_bytes=int(budget)),
    )(x, scale1, bias_eff, params["w_lin"])


def final_layer_ref(x, c, w_ada, b_ada, w_lin, b_lin):
    """Pure-JAX reference (mirrors the PyTorch forward exactly)."""
    silu_c = c * jax.nn.sigmoid(c)
    ada = silu_c @ w_ada + b_ada
    H = x.shape[-1]
    shift, scale = ada[:, :H], ada[:, H:]
    mean = jnp.mean(x, axis=-1, keepdims=True)
    var = jnp.mean((x - mean) ** 2, axis=-1, keepdims=True)
    x_norm = (x - mean) * jax.lax.rsqrt(var + 1e-6)
    x_mod = x_norm * (1.0 + scale[:, None, :]) + shift[:, None, :]
    return x_mod @ w_lin + b_lin


if __name__ == "__main__":
    def make_inputs(key, B, T, H, D, out_dim, dtype=jnp.float32):
        kx, kc, k1, k2, k3, k4 = jax.random.split(key, 6)
        x = jax.random.normal(kx, (B, T, H), dtype=dtype)
        c = jax.random.normal(kc, (B, D), dtype=dtype)
        w_ada = jax.random.normal(k1, (D, 2 * H), dtype=jnp.float32) * 0.05
        b_ada = jax.random.normal(k2, (2 * H,), dtype=jnp.float32) * 0.05
        w_lin = jax.random.normal(k3, (H, out_dim), dtype=jnp.float32) * 0.05
        b_lin = jax.random.normal(k4, (out_dim,), dtype=jnp.float32) * 0.05
        return x, c, w_ada, b_ada, w_lin, b_lin

    # ---- Test A: tiny shapes, f32 matmul path, tight tolerance. ----
    B, T, H, D = 2, 8, 32, 16
    patch_size, out_channels = 2, 4
    out_dim = patch_size * patch_size * out_channels          # 16
    x, c, w_ada, b_ada, w_lin, b_lin = make_inputs(
        jax.random.PRNGKey(0), B, T, H, D, out_dim)
    ref = final_layer_ref(x, c, w_ada, b_ada, w_lin, b_lin)

    params_f32 = prepare_final_layer_params(w_ada, b_ada, w_lin, b_lin,
                                            matmul_dtype=jnp.float32)
    out = jax.block_until_ready(final_layer(x, c, params=params_f32))
    assert out.shape == (B, T, out_dim)
    assert jnp.allclose(out, ref, atol=1e-4, rtol=1e-4)

    # ---- Test B: default bf16 MXU path with lane-padded output layout. ----
    params_bf16_pad = prepare_final_layer_params(
        w_ada, b_ada, w_lin, b_lin, matmul_dtype=jnp.bfloat16,
        pad_out_lanes=True)
    out_p = jax.block_until_ready(final_layer(x, c, params=params_bf16_pad))
    assert out_p.shape == (B, T, 128)
    assert jnp.allclose(out_p[..., :out_dim], ref, atol=3e-2, rtol=3e-2)
    assert jnp.allclose(out_p[..., out_dim:], 0.0)

    # ---- Test C: multi-tile + ragged token grid, bf16, unpadded output. ----
    B2, T2, H2, D2, out2 = 2, 72, 128, 64, 16
    x2, c2, wa2, ba2, wl2, bl2 = make_inputs(
        jax.random.PRNGKey(1), B2, T2, H2, D2, out2)
    params2 = prepare_final_layer_params(wa2, ba2, wl2, bl2)   # bf16 default
    out2_ = jax.block_until_ready(final_layer(x2, c2, params=params2, tile_t=32))
    ref2 = final_layer_ref(x2, c2, wa2, ba2, wl2, bl2)
    assert out2_.shape == (B2, T2, out2)
    assert jnp.allclose(out2_, ref2, atol=5e-2, rtol=5e-2)

    print("KERNEL_OK")
</pallas_src>

<mosaic_0001>
module attributes {stable_mosaic.version = 11 : i64} {
  func.func @_adaln_kernel(%arg0: memref<2x16xf32, #tpu.memory_space<vmem>>, %arg1: memref<16x32xf32, #tpu.memory_space<vmem>>, %arg2: memref<16x32xf32, #tpu.memory_space<vmem>>, %arg3: memref<1x32xf32, #tpu.memory_space<vmem>>, %arg4: memref<1x32xf32, #tpu.memory_space<vmem>>, %arg5: memref<32x16xf32, #tpu.memory_space<vmem>>, %arg6: memref<1x16xf32, #tpu.memory_space<vmem>>, %arg7: memref<2x32xf32, #tpu.memory_space<vmem>>, %arg8: memref<2x16xf32, #tpu.memory_space<vmem>>) attributes {dimension_semantics = [], scalar_prefetch = 0 : i64, scratch_operands = 0 : i64, tpu.core_type = #tpu.core_type<tc>} {
    %c0 = arith.constant 0 : index
    %c0_0 = arith.constant 0 : index
    %0 = vector.load %arg0[%c0, %c0_0] : memref<2x16xf32, #tpu.memory_space<vmem>>, vector<2x16xf32>
    %1 = arith.negf %0 : vector<2x16xf32>
    %2 = math.exp %1 : vector<2x16xf32>
    %cst = arith.constant 1.000000e+00 : f32
    %3 = vector.broadcast %cst : f32 to vector<2x16xf32>
    %4 = arith.addf %3, %2 : vector<2x16xf32>
    %5 = arith.divf %3, %4 : vector<2x16xf32>
    %6 = arith.mulf %0, %5 : vector<2x16xf32>
    %c0_1 = arith.constant 0 : index
    %c0_2 = arith.constant 0 : index
    %7 = vector.load %arg1[%c0_1, %c0_2] : memref<16x32xf32, #tpu.memory_space<vmem>>, vector<16x32xf32>
    %cst_3 = arith.constant dense<0.000000e+00> : vector<2x32xf32>
    %8 = tpu.matmul %6, %7, %cst_3 {dimension_numbers = #tpu.dot_dimension_numbers<[1], [0], [0], [1], [0, 0, 1, 1], [], []>} : vector<2x16xf32>, vector<16x32xf32>, vector<2x32xf32> -> vector<2x32xf32>
    %c0_4 = arith.constant 0 : index
    %c0_5 = arith.constant 0 : index
    %9 = vector.load %arg3[%c0_4, %c0_5] : memref<1x32xf32, #tpu.memory_space<vmem>>, vector<1x32xf32>
    %10 = vector.broadcast %9 : vector<1x32xf32> to vector<2x32xf32>
    %11 = arith.addf %8, %10 : vector<2x32xf32>
    %c0_6 = arith.constant 0 : index
    %c0_7 = arith.constant 0 : index
    %12 = vector.load %arg2[%c0_6, %c0_7] : memref<16x32xf32, #tpu.memory_space<vmem>>, vector<16x32xf32>
    %cst_8 = arith.constant dense<0.000000e+00> : vector<2x32xf32>
    %13 = tpu.matmul %6, %12, %cst_8 {dimension_numbers = #tpu.dot_dimension_numbers<[1], [0], [0], [1], [0, 0, 1, 1], [], []>} : vector<2x16xf32>, vector<16x32xf32>, vector<2x32xf32> -> vector<2x32xf32>
    %cst_9 = arith.constant 1.000000e+00 : f32
    %14 = vector.broadcast %cst_9 : f32 to vector<2x32xf32>
    %15 = arith.addf %14, %13 : vector<2x32xf32>
    %c0_10 = arith.constant 0 : index
    %c0_11 = arith.constant 0 : index
    %16 = vector.load %arg4[%c0_10, %c0_11] : memref<1x32xf32, #tpu.memory_space<vmem>>, vector<1x32xf32>
    %17 = vector.broadcast %16 : vector<1x32xf32> to vector<2x32xf32>
    %18 = arith.addf %15, %17 : vector<2x32xf32>
    %c0_12 = arith.constant 0 : index
    %c0_13 = arith.constant 0 : index
    %19 = vector.load %arg7[%c0_12, %c0_13] : memref<2x32xf32, #tpu.memory_space<vmem>>, vector<2x32xf32>
    tpu.vector_store %arg7[%c0_12, %c0_13], %18 {strides = array<i32>} : memref<2x32xf32, #tpu.memory_space<vmem>>, vector<2x32xf32>,
    %c0_14 = arith.constant 0 : index
    %c0_15 = arith.constant 0 : index
    %20 = vector.load %arg5[%c0_14, %c0_15] : memref<32x16xf32, #tpu.memory_space<vmem>>, vector<32x16xf32>
    %cst_16 = arith.constant dense<0.000000e+00> : vector<2x16xf32>
    %21 = tpu.matmul %11, %20, %cst_16 {dimension_numbers = #tpu.dot_dimension_numbers<[1], [0], [0], [1], [0, 0, 1, 1], [], []>} : vector<2x32xf32>, vector<32x16xf32>, vector<2x16xf32> -> vector<2x16xf32>
    %c0_17 = arith.constant 0 : index
    %c0_18 = arith.constant 0 : index
    %22 = vector.load %arg6[%c0_17, %c0_18] : memref<1x16xf32, #tpu.memory_space<vmem>>, vector<1x16xf32>
    %23 = vector.broadcast %22 : vector<1x16xf32> to vector<2x16xf32>
    %24 = arith.addf %21, %23 : vector<2x16xf32>
    %c0_19 = arith.constant 0 : index
    %c0_20 = arith.constant 0 : index
    %25 = vector.load %arg8[%c0_19, %c0_20] : memref<2x16xf32, #tpu.memory_space<vmem>>, vector<2x16xf32>
    tpu.vector_store %arg8[%c0_19, %c0_20], %24 {strides = array<i32>} : memref<2x16xf32, #tpu.memory_space<vmem>>, vector<2x16xf32>,
    return
  }
}

</mosaic_0001>

<bundles_post_ra>
// kernel: tpu_custom_call.1
= control target key start
LH: loop header
LB: loop body
LE: loop exit
PB: predicated region body
PF: predicated region fallthrough
CT: control target
= control target key end

     0   :  { %14 = vsyncpa [#allocation3], 0  ;;  %s330_s0 = inlined_call_operand.vmem [shape: f32[2,16], index: 0, kind: input, shape index: {}]   ;;  %s331_s1 = inlined_call_operand.vmem [shape: f32[16,32], index: 1, kind: input, shape index: {}]   ;;  %s332_s2 = inlined_call_operand.vmem [shape: f32[16,32], index: 2, kind: input, shape index: {}]   ;;  %s333_s3 = inlined_call_operand.vmem [shape: f32[1,32], index: 3, kind: input, shape index: {}]   ;;  %s334_s4 = inlined_call_operand.vmem [shape: f32[1,32], index: 4, kind: input, shape index: {}]   ;;  %s335_s5 = inlined_call_operand.vmem [shape: f32[32,16], index: 5, kind: input, shape index: {}]   ;;  %s336_s6 = inlined_call_operand.vmem [shape: f32[1,16], index: 6, kind: input, shape index: {}]   ;;  %s337_s7 = inlined_call_operand.hbm [shape: f32[2,32], index: 7, kind: output, shape index: {0}]   ;;  %s338_s8 = inlined_call_operand.hbm [shape: f32[2,16], index: 8, kind: output, shape index: {1}]  }
   0x1   :  { %v52_v0 = vld [vmem:[%s331_s1 + $0x8] sm:$0xff]  ;;  %v51_v1 = vld [vmem:[%s331_s1] sm:$0xff]  ;;  %v113_v4 = vld [vmem:[%s335_s5 + $0x18] sm:$0xff] }
   0x2   :  { %v30_v2 = vld [vmem:[%s330_s0] sm:$0x3]  ;;  %75 = vmatpush.msra.mxu0 %v52_v0  ;;  %v112_v5 = vld [vmem:[%s335_s5 + $0x10] sm:$0xff]  ;;  %134 = vmatpush.msra.mxu2 %v113_v4 }
   0x3   :  { %v176_v3 = vmul.f32 -1.442695, %v30_v2 }
   0x4   :  { %76 = vmatpush.msra.mxu0 %v51_v1 }
   0x5   :  { %185 = vpow2.f32 %v176_v3 }
   0x6   :  { %15 = vsyncpa [#allocation5], 0  ;;  %135 = vmatpush.msra.mxu2 %v112_v5  ;;  %vm57_vm4 = vcmask 130048   ;;  %v111_v19 = vld [vmem:[%s335_s5 + $0x8] sm:$0xff]  ;;  %v110_v20 = vld [vmem:[%s335_s5] sm:$0xff]  ;;  %vm118_vm5 = vcmask 261120  }
   0x7   :  { %v82_v21 = vld [vmem:[%s332_s2 + $0x8] sm:$0xff]  ;;  %v81_v22 = vld [vmem:[%s332_s2] sm:$0xff]  ;;  %s241_s24 = smov [#allocation2]   ;;  %s151_s27 = sshll.u32 %s337_s7, 4  ;;  %vm108_vm6 = vcmask 254976   ;;  %vm142_vm7 = vcmask 123904   ;;  %s152_s27 = int_to_ptr.hbm [resolvable:$true] %s151_s27 }
   0x8   :  { %136 = vmatpush.msra.mxu2 %v111_v19  ;;  %97 = vmatpush.msra.mxu1 %v82_v21  ;;  %v182_v23 = vld [vmem:[%s333_s3] ss:$0 sm:$0xff]  ;;  %s149_s25 = sshll.u32 %s241_s24, 4  ;;  %s242_s29 = smov [#allocation4]   ;;  %s150_s25 = int_to_ptr.vmem [resolvable:$true] %s149_s25 }
   0x9   :  { %v183_v26 = vld [vmem:[%s334_s4] ss:$0 sm:$0xff]  ;;  %s160_s4 = sshll.u32 %s242_s29, 4  ;;  %s162_s10 = sshll.u32 %s338_s8, 4  ;;  %s161_s4 = int_to_ptr.vmem [resolvable:$true] %s160_s4  ;;  %s163_s10 = int_to_ptr.hbm [resolvable:$true] %s162_s10 }
   0xa   :  { %137 = vmatpush.msra.mxu2 %v110_v20  ;;  %98 = vmatpush.msra.mxu1 %v81_v22  ;;  %v184_v30 = vld [vmem:[%s336_s6] ss:$0 sm:$0xff] }
   0xb   :  { %v186_v6 = vpop.eup %185 }
   0xc   :  { %v34_v7 = vadd.f32 1.0, %v186_v6 }
   0xe   :  { %187 = vrcp.f32 %v34_v7  ;;  %v46_v10 = vand.u32 2147483648, %v34_v7  ;;  %vm40_vm0 = vweird.f32 %v34_v7  ;;  %v44_v12 = vand.u32 2147483647, %v34_v7 }
  0x10   :  { %v47_v14 = vor.u32 1.1754944e-38, %v46_v10  ;;  %vm45_vm3 = vcmp.eq.f32.partialorder %v44_v12, 8.507059e+37 }
  0x14   :  { %v188_v8 = vpop.eup %187 }
  0x15   :  { %v36_v9 = vmul.f32 %v188_v8, %v34_v7  ;;  %vm41_vm1 = vweird.f32 %v188_v8 }
  0x16   :  { %vm42_vm2 = vmor %vm40_vm0, %vm41_vm1 }
  0x17   :  { %v37_v11 = vsub.f32 1.0, %v36_v9 }
  0x19   :  { %v38_v13 = vmul.f32 %v188_v8, %v37_v11 }
  0x1b   :  { %v39_v15 = vadd.f32 %v188_v8, %v38_v13 }
  0x1d   :  { %v43_v16 = vsel %vm42_vm2, %v188_v8, %v39_v15 }
  0x1e   :  { %v48_v17 = vsel %vm45_vm3, %v47_v14, %v43_v16 }
  0x1f   :  { %v50_v18 = vmul.f32 %v48_v17, %v30_v2 }
  0x21   :  { %177 = vmatmul.msk.f32.vlgmr.msra.gmra.mxu0 %vm57_vm4, %v50_v18  ;;  %178 = vmatmul.msk.f32.vlgmr.msra.gmra.mxu1 %vm57_vm4, %v50_v18 }
  0x9e   :  { %v78_v24 = vpop.f32.mrf.mxu0  ;;  %v100_v27 = vpop.f32.mrf.mxu1 }
  0x9f   :  { %v79_v25 = vadd.f32 %v182_v23, %v78_v24  ;;  %v101_v28 = vadd.f32 1.0, %v100_v27 }
  0xa1   :  { %179 = vmatmul.msk.f32.vlgmr.msra.gmra.mxu2 %vm118_vm5, %v79_v25  ;;  %v107_v29 = vadd.f32 %v183_v26, %v101_v28 }
  0xa3   :  { %109 = vst.msk [vmem:[#allocation2] sm:$0x3] %vm108_vm6, %v107_v29 }
  0xa4   :  { %154 = dma.vmem_to_hbm [thread:$0]  %s150_s25, 32, %s152_s27, [#allocation3]  }
 0x124   :  { %v139_v31 = vpop.f32.mrf.mxu2 }
 0x125   :  { %v140_v32 = vadd.f32 %v184_v30, %v139_v31 }
 0x127   :  { %143 = vst.msk [vmem:[#allocation4] sm:$0x3] %vm142_vm7, %v140_v32 }
 0x128   :  { %165 = dma.vmem_to_hbm [thread:$0]  %s161_s4, 32, %s163_s10, [#allocation5]  }
 0x129   :  { %237 = dma.done.wait [#allocation3], 32  }
 0x12a   :  { %238 = vsyncadd [#allocation3], 4294967264 }
 0x12b   :  { %239 = dma.done.wait [#allocation5], 32  }
 0x12c   :  { %240 = vsyncadd [#allocation5], 4294967264 }
 0x12d   :  { %174 = vsyncpa [#allocation3], 1 }
 0x12e   :  { %175 = vsyncpa [#allocation5], 1 }

</bundles_post_ra>
